<compile_context>
chip_gen: v5e
topology: v5e:2x2
jax: 0.10.0
libtpu: 0.0.40
codegen_flags: <defaults>
</compile_context>

<pallas_src>
import functools

import jax
import jax.numpy as jnp
from jax.experimental import pallas as pl
from jax.experimental.pallas import tpu as pltpu


# ----------------------------------------------------------------------------
# math (shared by the kernel body and the tiny jnp tail path)
# ----------------------------------------------------------------------------
def _quant_math_f32(x32, pre_scale, clip_hi, scale):
    # clip(x*0.1, 0, 1) * inv_scale  ==  clip(x*(0.1*inv_scale), 0, inv_scale)
    # after the clip every value is >= 0, so Round (sign*floor(abs+0.5)) is
    # just floor(v + 0.5).
    v = jnp.clip(x32 * pre_scale, 0.0, clip_hi)
    return jnp.floor(v + 0.5) * scale


def _dorefa_act_quant_kernel(x_ref, o_ref, *, pre_scale, clip_hi, scale):
    x32 = x_ref[...].astype(jnp.float32)  # f32 internal compute (bf16 safety)
    o_ref[...] = _quant_math_f32(x32, pre_scale, clip_hi, scale).astype(o_ref.dtype)


def _quant_jnp(x, pre_scale, clip_hi, scale):
    return _quant_math_f32(x.astype(jnp.float32), pre_scale, clip_hi, scale).astype(x.dtype)


# ----------------------------------------------------------------------------
# generation-aware tiling
# ----------------------------------------------------------------------------
def _block_bytes_and_vmem_limit():
    kind = ""
    try:
        kind = jax.devices()[0].device_kind.lower()
    except Exception:
        pass
    if ("v6" in kind) or ("v7" in kind) or ("7x" in kind):
        # v6e / v7x: 4 MiB blocks -> 16 MiB double-buffered in+out, well under
        # the 32 MiB scoped default (and 64 MiB physical VMEM on v7x).
        return 4 * 1024 * 1024, 32 * 1024 * 1024
    # v5e-class / older / unknown: 2 MiB blocks keep double-buffered in+out
    # (~8 MiB) inside the 16 MiB scoped-VMEM default; no override needed.
    return 2 * 1024 * 1024, None


# core-parallel support is probed once and cached.
_SEMANTICS_CACHE = {}


def _pallas_quant_2d(x2d, block_rows, vmem_limit_bytes, pre_scale, clip_hi, scale):
    rows, lanes = x2d.shape
    kernel = functools.partial(
        _dorefa_act_quant_kernel, pre_scale=pre_scale, clip_hi=clip_hi, scale=scale)

    def build(dim_semantics):
        params = dict(dimension_semantics=(dim_semantics,))
        if vmem_limit_bytes is not None:
            params["vmem_limit_bytes"] = vmem_limit_bytes
        return pl.pallas_call(
            kernel,
            out_shape=jax.ShapeDtypeStruct((rows, lanes), x2d.dtype),
            grid_spec=pltpu.PrefetchScalarGridSpec(
                num_scalar_prefetch=0,
                grid=(pl.cdiv(rows, block_rows),),
                in_specs=[pl.BlockSpec((block_rows, lanes), lambda i: (i, 0))],
                out_specs=pl.BlockSpec((block_rows, lanes), lambda i: (i, 0)),
            ),
            compiler_params=pltpu.CompilerParams(**params),
        )

    # Prefer CORE_PARALLEL so v7x's two TensorCores both stream; fall back to
    # PARALLEL (single-TC chips are unaffected either way).
    if not _SEMANTICS_CACHE.get("core_parallel_failed", False):
        try:
            out = build(pltpu.CORE_PARALLEL)(x2d)
            if not _SEMANTICS_CACHE.get("core_parallel_ok", False):
                out = jax.block_until_ready(out)  # surface deferred errors once
                _SEMANTICS_CACHE["core_parallel_ok"] = True
            return out
        except Exception:
            _SEMANTICS_CACHE["core_parallel_failed"] = True
    return build(pltpu.PARALLEL)(x2d)


# ----------------------------------------------------------------------------
# public wrapper (forward pass of dorefa_ActivationQuantizer)
# ----------------------------------------------------------------------------
def dorefa_activation_quantizer(x, a_bits):
    """Forward pass of dorefa_ActivationQuantizer. `a_bits` is a static int."""
    if a_bits == 32:
        return x
    if a_bits == 1:
        raise AssertionError("Binary quantization is not supported")

    inv_scale = float(2 ** a_bits - 1)   # exact integer-derived constant
    scale = 1.0 / inv_scale
    pre_scale = 0.1 * inv_scale          # folded 0.1 * (1/scale)

    orig_shape = x.shape
    dtype = x.dtype
    total = x.size
    if total == 0:
        return x

    LANES = 128
    itemsize = jnp.dtype(dtype).itemsize
    min_sublanes = max(8, 32 // itemsize)        # 8 rows f32, 16 bf16, 32 int8
    tile_elems = LANES * min_sublanes

    flat = jnp.reshape(x, (total,))              # bitcast for contiguous input
    aligned = (total // tile_elems) * tile_elems

    if aligned == 0:
        # smaller than one native tile: not worth a kernel launch
        return jnp.reshape(_quant_jnp(flat, pre_scale, inv_scale, scale), orig_shape)

    head = flat if aligned == total else flat[:aligned]
    rows = aligned // LANES
    x2d = jnp.reshape(head, (rows, LANES))

    block_bytes, vmem_limit = _block_bytes_and_vmem_limit()
    block_rows = (block_bytes // (LANES * itemsize)) // min_sublanes * min_sublanes
    block_rows = min(max(block_rows, min_sublanes), rows)

    out2d = _pallas_quant_2d(x2d, block_rows, vmem_limit, pre_scale, inv_scale, scale)

    if aligned == total:
        return jnp.reshape(out2d, orig_shape)

    # awkward size: only the (< tile_elems) tail goes through plain jnp.
    tail_out = _quant_jnp(flat[aligned:], pre_scale, inv_scale, scale)
    out_flat = jnp.concatenate([jnp.reshape(out2d, (aligned,)), tail_out])
    return jnp.reshape(out_flat, orig_shape)


# ----------------------------------------------------------------------------
# reference + tests
# ----------------------------------------------------------------------------
def _reference(x, a_bits):
    """Faithful f32 transcription of the PyTorch forward."""
    inv_scale = float(2 ** a_bits - 1)
    scale = 1.0 / inv_scale
    y = jnp.clip(x.astype(jnp.float32) * 0.1, 0.0, 1.0)
    v = y / scale
    r = jnp.sign(v) * jnp.floor(jnp.abs(v) + 0.5)
    return (r * scale).astype(x.dtype)


def _check(out, x, a_bits, tag):
    ref = _reference(x, a_bits)
    scale = 1.0 / float(2 ** a_bits - 1)
    assert out.shape == x.shape and out.dtype == x.dtype, tag
    diff = jnp.abs(out.astype(jnp.float32) - ref.astype(jnp.float32))
    # Exact except at (measure-zero) floor(v+0.5) rounding ties, where the
    # folded multiply ordering may pick the adjacent quantization level.
    assert float(jnp.max(diff)) <= scale * 1.05 + 1e-6, tag
    assert float(jnp.mean((diff <= 1e-6).astype(jnp.float32))) >= 0.99, tag


if __name__ == "__main__":
    a_bits = 4

    # 1) NCHW activations, aligned fast path (2*4*16*16 = 2048 = 2 native tiles)
    x = jax.random.normal(jax.random.PRNGKey(0), (2, 4, 16, 16), dtype=jnp.float32) * 5.0
    out = jax.block_until_ready(dorefa_activation_quantizer(x, a_bits))
    _check(out, x, a_bits, "f32 aligned")

    # 2) awkward size: aligned prefix through the kernel + jnp tail (no full pad/slice pass)
    x2 = jax.random.normal(jax.random.PRNGKey(1), (3, 5, 9, 11), dtype=jnp.float32) * 5.0
    out2 = jax.block_until_ready(dorefa_activation_quantizer(x2, a_bits))
    _check(out2, x2, a_bits, "f32 prefix+tail")

    # 3) bf16 activations (f32 internal compute inside the kernel)
    x3 = (jax.random.normal(jax.random.PRNGKey(2), (2, 8, 16, 16), dtype=jnp.float32) * 5.0
          ).astype(jnp.bfloat16)
    out3 = jax.block_until_ready(dorefa_activation_quantizer(x3, a_bits))
    _check(out3, x3, a_bits, "bf16 aligned")

    # 4) tiny input (below one native tile -> pure jnp path)
    x4 = jax.random.normal(jax.random.PRNGKey(3), (2, 3, 7, 5), dtype=jnp.float32) * 5.0
    out4 = jax.block_until_ready(dorefa_activation_quantizer(x4, a_bits))
    _check(out4, x4, a_bits, "f32 tiny")

    # 5) a_bits == 32 is identity
    out5 = dorefa_activation_quantizer(x, 32)
    assert jnp.array_equal(out5, x)

    print("KERNEL_OK")
</pallas_src>

<mosaic_0001>
module attributes {stable_mosaic.version = 11 : i64} {
  func.func @_dorefa_act_quant_kernel(%arg0: i32, %arg1: memref<16x128xf32, #tpu.memory_space<vmem>>, %arg2: memref<16x128xf32, #tpu.memory_space<vmem>>) attributes {dimension_semantics = [#tpu.dimension_semantics<core_parallel>], iteration_bounds = array<i64: 1>, scalar_prefetch = 0 : i64, scratch_operands = 0 : i64, tpu.core_type = #tpu.core_type<tc>, window_params = [{transform_indices = @transform_0, window_bounds = array<i64: 16, 128>}, {transform_indices = @transform_1, window_bounds = array<i64: 16, 128>}]} {
    %c0 = arith.constant 0 : index
    %c0_0 = arith.constant 0 : index
    %0 = vector.load %arg1[%c0, %c0_0] : memref<16x128xf32, #tpu.memory_space<vmem>>, vector<16x128xf32>
    %cst = arith.constant 1.500000e+00 : f32
    %1 = vector.broadcast %cst : f32 to vector<16x128xf32>
    %2 = arith.mulf %0, %1 : vector<16x128xf32>
    %cst_1 = arith.constant 0.000000e+00 : f32
    %cst_2 = arith.constant 1.500000e+01 : f32
    %3 = vector.broadcast %cst_1 : f32 to vector<16x128xf32>
    %4 = arith.maximumf %3, %2 : vector<16x128xf32>
    %5 = vector.broadcast %cst_2 : f32 to vector<16x128xf32>
    %6 = arith.minimumf %5, %4 : vector<16x128xf32>
    %cst_3 = arith.constant 5.000000e-01 : f32
    %7 = vector.broadcast %cst_3 : f32 to vector<16x128xf32>
    %8 = arith.addf %6, %7 : vector<16x128xf32>
    %9 = math.floor %8 : vector<16x128xf32>
    %cst_4 = arith.constant 0.0666666701 : f32
    %10 = vector.broadcast %cst_4 : f32 to vector<16x128xf32>
    %11 = arith.mulf %9, %10 : vector<16x128xf32>
    %c0_5 = arith.constant 0 : index
    %c0_6 = arith.constant 0 : index
    %12 = vector.load %arg2[%c0_5, %c0_6] : memref<16x128xf32, #tpu.memory_space<vmem>>, vector<16x128xf32>
    tpu.vector_store %arg2[%c0_5, %c0_6], %11 {strides = array<i32>} : memref<16x128xf32, #tpu.memory_space<vmem>>, vector<16x128xf32>,
    return
  }
  func.func @transform_0(%arg0: i32) -> (i32, i32) {
    %c0_i32 = arith.constant 0 : i32
    %c0_i32_0 = arith.constant 0 : i32
    return %arg0, %c0_i32 : i32, i32
  }
  func.func @transform_1(%arg0: i32) -> (i32, i32) {
    %c0_i32 = arith.constant 0 : i32
    %c0_i32_0 = arith.constant 0 : i32
    return %arg0, %c0_i32 : i32, i32
  }
}

module attributes {stable_mosaic.version = 11 : i64} {
  func.func @_dorefa_act_quant_kernel(%arg0: i32, %arg1: memref<16x128xf32, #tpu.memory_space<vmem>>, %arg2: memref<16x128xf32, #tpu.memory_space<vmem>>) attributes {dimension_semantics = [#tpu.dimension_semantics<parallel>], iteration_bounds = array<i64: 1>, scalar_prefetch = 0 : i64, scratch_operands = 0 : i64, tpu.core_type = #tpu.core_type<tc>, window_params = [{transform_indices = @transform_0, window_bounds = array<i64: 16, 128>}, {transform_indices = @transform_1, window_bounds = array<i64: 16, 128>}]} {
    %c0 = arith.constant 0 : index
    %c0_0 = arith.constant 0 : index
    %0 = vector.load %arg1[%c0, %c0_0] : memref<16x128xf32, #tpu.memory_space<vmem>>, vector<16x128xf32>
    %cst = arith.constant 1.500000e+00 : f32
    %1 = vector.broadcast %cst : f32 to vector<16x128xf32>
    %2 = arith.mulf %0, %1 : vector<16x128xf32>
    %cst_1 = arith.constant 0.000000e+00 : f32
    %cst_2 = arith.constant 1.500000e+01 : f32
    %3 = vector.broadcast %cst_1 : f32 to vector<16x128xf32>
    %4 = arith.maximumf %3, %2 : vector<16x128xf32>
    %5 = vector.broadcast %cst_2 : f32 to vector<16x128xf32>
    %6 = arith.minimumf %5, %4 : vector<16x128xf32>
    %cst_3 = arith.constant 5.000000e-01 : f32
    %7 = vector.broadcast %cst_3 : f32 to vector<16x128xf32>
    %8 = arith.addf %6, %7 : vector<16x128xf32>
    %9 = math.floor %8 : vector<16x128xf32>
    %cst_4 = arith.constant 0.0666666701 : f32
    %10 = vector.broadcast %cst_4 : f32 to vector<16x128xf32>
    %11 = arith.mulf %9, %10 : vector<16x128xf32>
    %c0_5 = arith.constant 0 : index
    %c0_6 = arith.constant 0 : index
    %12 = vector.load %arg2[%c0_5, %c0_6] : memref<16x128xf32, #tpu.memory_space<vmem>>, vector<16x128xf32>
    tpu.vector_store %arg2[%c0_5, %c0_6], %11 {strides = array<i32>} : memref<16x128xf32, #tpu.memory_space<vmem>>, vector<16x128xf32>,
    return
  }
  func.func @transform_0(%arg0: i32) -> (i32, i32) {
    %c0_i32 = arith.constant 0 : i32
    %c0_i32_0 = arith.constant 0 : i32
    return %arg0, %c0_i32 : i32, i32
  }
  func.func @transform_1(%arg0: i32) -> (i32, i32) {
    %c0_i32 = arith.constant 0 : i32
    %c0_i32_0 = arith.constant 0 : i32
    return %arg0, %c0_i32 : i32, i32
  }
}

</mosaic_0001>

<bundles_post_ra>
// kernel: tpu_custom_call.1
= control target key start
LH: loop header
LB: loop body
LE: loop exit
PB: predicated region body
PF: predicated region fallthrough
CT: control target
= control target key end

     0   :  { %s148_s6 = sld [smem:[#allocation0]]   ;;  %s169_s0 = inlined_call_operand.hbm [shape: f32[16,128], index: 0, kind: input, shape index: {}]   ;;  %s170_s1 = inlined_call_operand.hbm [shape: f32[16,128], index: 1, kind: output, shape index: {}]  }
   0x1   :  { %6 = vsyncpa [#allocation3], 0 }
   0x2   :  { %7 = vsyncpa [#allocation4], 0  ;;  %s134_s11 = smov [#allocation2]   ;;  %s86_s18 = scalar_lea.hbm %s169_s0, 16 }
   0x3   :  { %s17_s12 = sshll.u32 %s134_s11, 4  ;;  %s18_s12 = int_to_ptr.vmem [resolvable:$true] %s17_s12 }
   0x6   :  { %s76_s7 = sshll.u32 %s148_s6, 4 }
   0x7   :  { %s14_s10 = scalar_lea.hbm %s169_s0, %s76_s7 }
   0x8   :  { %s15_s13 = sshll.u32 %s14_s10, 4  ;;  %s16_s13 = int_to_ptr.hbm [resolvable:$true] %s15_s13 }
   0x9   :  { %s82_s14 = sshra.s32 %s16_s13, 4  ;;  %s83_s14 = int_to_ptr.hbm [resolvable:$true] %s82_s14 }
   0xa   :  { %s84_s15 = scalar_lea.hbm %s83_s14, 16 }
   0xb   :  { %p85_p0 = scmp.ne.s32.totalorder %s83_s14, %s84_s15  ;;  %p88_p1 = scmp.lt.s32.totalorder %s86_s18, %s84_s15 }
   0xd   :  { %p90_p2 = pnand %p88_p1, %p85_p0 }
   0xf   :  { %93 = shalt.err (!%p90_p2)
}
  0x10   :  { %s135_s19 = smov 128   ;;  %s136_s20 = smov 8  }
  0x11   :  { %23 = dma.hbm_to_vmem [thread:$0]  %s16_s13, 256, %s18_s12, [#allocation3], %s135_s19, %s135_s19, %s136_s20  }
  0x12   :  { %130 = dma.done.wait [#allocation3], 256  }
  0x13   :  { %131 = vsyncadd [#allocation3], 4294967040  ;;  %v30_v0 = vld [vmem:[#allocation2] sm:$0xff]  ;;  %v31_v1 = vld [vmem:[#allocation2 + $0x8] sm:$0xff]  ;;  %s52_s22 = scalar_lea.hbm %s170_s1, %s76_s7  ;;  %s137_s23 = smov [#allocation5]  }
  0x14   :  { %v32_v2 = vmul.f32 1.5, %v30_v0  ;;  %v33_v3 = vmul.f32 1.5, %v31_v1  ;;  %s53_s24 = sshll.u32 %s137_s23, 4  ;;  %s55_s25 = sshll.u32 %s52_s22, 4  ;;  %s54_s24 = int_to_ptr.vmem [resolvable:$true] %s53_s24  ;;  %s56_s25 = int_to_ptr.hbm [resolvable:$true] %s55_s25 }
  0x15   :  { %s118_s26 = sshra.s32 %s56_s25, 4  ;;  %s122_s30 = scalar_lea.hbm %s170_s1, 16  ;;  %s119_s26 = int_to_ptr.hbm [resolvable:$true] %s118_s26 }
  0x16   :  { %v34_v4 = vmax.f32 %v32_v2, 0.0  ;;  %v35_v5 = vmax.f32 %v33_v3, 0.0  ;;  %s120_s27 = scalar_lea.hbm %s119_s26, 16 }
  0x17   :  { %p121_p3 = scmp.ne.s32.totalorder %s119_s26, %s120_s27  ;;  %p124_p4 = scmp.lt.s32.totalorder %s122_s30, %s120_s27 }
  0x18   :  { %v36_v6 = vmin.f32 %v34_v4, 15.0  ;;  %v37_v7 = vmin.f32 %v35_v5, 15.0 }
  0x19   :  { %p126_p5 = pnand %p124_p4, %p121_p3 }
  0x1a   :  { %v38_v8 = vadd.f32 0.5, %v36_v6  ;;  %v39_v9 = vadd.f32 0.5, %v37_v7 }
  0x1c   :  { %v40_v10 = vfloor.f32 %v38_v8  ;;  %v41_v11 = vfloor.f32 %v39_v9 }
  0x1e   :  { %v42_v12 = vmul.f32 0.06666667, %v40_v10  ;;  %v43_v13 = vmul.f32 0.06666667, %v41_v11 }
  0x20   :  { %44 = vst [vmem:[#allocation5] sm:$0xff] %v42_v12 }
  0x21   :  { %45 = vst [vmem:[#allocation5 + $0x8] sm:$0xff] %v43_v13 }
  0x22   :  { %129 = shalt.err (!%p126_p5)
}
  0x23   :  { %61 = dma.vmem_to_hbm [thread:$0]  %s54_s24, 256, %s56_s25, [#allocation4], %s135_s19, %s135_s19, %s136_s20  }
  0x24   :  { %132 = dma.done.wait [#allocation4], 256  }
  0x25   :  { %133 = vsyncadd [#allocation4], 4294967040 }
  0x26   :  { %66 = vsyncpa [#allocation3], 1 }
  0x27   :  { %67 = vsyncpa [#allocation4], 1 }

// kernel: tpu_custom_call.1
= control target key start
LH: loop header
LB: loop body
LE: loop exit
PB: predicated region body
PF: predicated region fallthrough
CT: control target
= control target key end

     0   :  { %6 = vsyncpa [#allocation3], 0  ;;  %s136_s0 = inlined_call_operand.hbm [shape: f32[16,128], index: 0, kind: input, shape index: {}]   ;;  %s137_s1 = inlined_call_operand.hbm [shape: f32[16,128], index: 1, kind: output, shape index: {}]  }
   0x1   :  { %7 = vsyncpa [#allocation4], 0  ;;  %s12_s8 = sshll.u32 %s136_s0, 4  ;;  %s116_s9 = smov [#allocation2]   ;;  %s13_s8 = int_to_ptr.hbm [resolvable:$true] %s12_s8 }
   0x2   :  { %s14_s10 = sshll.u32 %s116_s9, 4  ;;  %s117_s11 = smov 128   ;;  %s15_s10 = int_to_ptr.vmem [resolvable:$true] %s14_s10 }
   0x3   :  { %s118_s12 = smov 8  }
   0x4   :  { %20 = dma.hbm_to_vmem [thread:$0]  %s13_s8, 256, %s15_s10, [#allocation3], %s117_s11, %s117_s11, %s118_s12  }
   0x5   :  { %112 = dma.done.wait [#allocation3], 256  }
   0x6   :  { %113 = vsyncadd [#allocation3], 4294967040  ;;  %v25_v0 = vld [vmem:[#allocation2] sm:$0xff]  ;;  %v26_v1 = vld [vmem:[#allocation2 + $0x8] sm:$0xff]  ;;  %s119_s0 = smov [#allocation5]   ;;  %s47_s16 = sshll.u32 %s137_s1, 4  ;;  %s48_s16 = int_to_ptr.hbm [resolvable:$true] %s47_s16 }
   0x7   :  { %v27_v2 = vmul.f32 1.5, %v25_v0  ;;  %v28_v3 = vmul.f32 1.5, %v26_v1  ;;  %s45_s13 = sshll.u32 %s119_s0, 4  ;;  %s46_s13 = int_to_ptr.vmem [resolvable:$true] %s45_s13 }
   0x9   :  { %v29_v4 = vmax.f32 %v27_v2, 0.0  ;;  %v30_v5 = vmax.f32 %v28_v3, 0.0 }
   0xb   :  { %v31_v6 = vmin.f32 %v29_v4, 15.0  ;;  %v32_v7 = vmin.f32 %v30_v5, 15.0 }
   0xd   :  { %v33_v8 = vadd.f32 0.5, %v31_v6  ;;  %v34_v9 = vadd.f32 0.5, %v32_v7 }
   0xf   :  { %v35_v10 = vfloor.f32 %v33_v8  ;;  %v36_v11 = vfloor.f32 %v34_v9 }
  0x11   :  { %v37_v12 = vmul.f32 0.06666667, %v35_v10  ;;  %v38_v13 = vmul.f32 0.06666667, %v36_v11 }
  0x13   :  { %39 = vst [vmem:[#allocation5] sm:$0xff] %v37_v12 }
  0x14   :  { %40 = vst [vmem:[#allocation5 + $0x8] sm:$0xff] %v38_v13 }
  0x15   :  { %53 = dma.vmem_to_hbm [thread:$0]  %s46_s13, 256, %s48_s16, [#allocation4], %s117_s11, %s117_s11, %s118_s12  }
  0x16   :  { %114 = dma.done.wait [#allocation4], 256  }
  0x17   :  { %115 = vsyncadd [#allocation4], 4294967040 }
  0x18   :  { %58 = vsyncpa [#allocation3], 1 }
  0x19   :  { %59 = vsyncpa [#allocation4], 1 }

</bundles_post_ra>
